<compile_context>
chip_gen: v7x
topology: tpu7x:2x2x1
jax: 0.10.0
libtpu: 0.0.40
codegen_flags: <defaults>
</compile_context>

<pallas_src>
import jax
import jax.numpy as jnp
from jax.experimental import pallas as pl
from jax.experimental.pallas import tpu as pltpu


def _normalize_kernel(sb_ref, x_ref, o_ref):
    # sb_ref: [TB, 2] f32 (col 0 = scale = 1/std, col 1 = bias = -mean/std)
    # x_ref / o_ref: [TB, TL]
    x = x_ref[...]
    scale = sb_ref[:, 0:1]          # [TB, 1], lane-broadcast against x
    bias = sb_ref[:, 1:2]           # [TB, 1]
    o_ref[...] = (x * scale + bias).astype(o_ref.dtype)


def _pick_lane_tile(L, target):
    """Largest lane tile <= target that is a multiple of 128 and divides L,
    so every DMA is full-size.  Falls back to the full dim (L <= target) or a
    ragged 128-aligned tile when no even divisor exists."""
    if L <= target:
        return L                                  # full dim: always legal
    cap = max((target // 128) * 128, 128)
    for cand in range(cap, 1023, -128):           # prefer even, reasonably big tiles
        if L % cand == 0:
            return cand
    return cap                                    # ragged last block (Pallas masks edges)


def image_normalize(x, mean, std, *, row_tile=256, lane_tile=8192):
    """Pallas equivalent of ImageNormalizer(mean, std)(x) == (x - mean) / std."""
    B, C, H, W = x.shape
    mean = jnp.asarray(mean, dtype=jnp.float32)
    std = jnp.asarray(std, dtype=jnp.float32)
    assert mean.shape == (C,) and std.shape == (C,)

    # PyTorch returns a float tensor; promote integer images (e.g. uint8) in
    # the wrapper so the kernel emits float32 instead of truncating.
    # TODO(synk): promote uint8 inside the kernel to halve the HBM read traffic.
    if jnp.issubdtype(x.dtype, jnp.floating):
        out_dtype = x.dtype
    else:
        out_dtype = jnp.float32
        x = x.astype(jnp.float32)

    # One row per (batch, channel) image plane -> lane-dense layout.
    R, L = B * C, H * W
    x2d = x.reshape(R, L)

    # Single per-row constant stream: [scale, bias] = [1/std, -mean/std].
    scale_row = jnp.tile(1.0 / std, B)            # (R,)
    bias_row = jnp.tile(-mean / std, B)           # (R,)
    sb = jnp.stack([scale_row, bias_row], axis=1)  # (R, 2) f32

    # Tile sizes: rows a multiple of 8 (or full R), lanes a multiple of 128
    # that evenly divides L when possible (or full L).
    TB = R if R <= row_tile else row_tile
    TL = _pick_lane_tile(L, lane_tile)
    grid = (pl.cdiv(R, TB), pl.cdiv(L, TL))

    in_itemsize = jnp.dtype(x.dtype).itemsize
    out_itemsize = jnp.dtype(out_dtype).itemsize
    cost = pl.CostEstimate(
        flops=2 * R * L,
        transcendentals=0,
        bytes_accessed=R * L * (in_itemsize + out_itemsize) + 2 * R * 4,
    )

    out2d = pl.pallas_call(
        _normalize_kernel,
        out_shape=jax.ShapeDtypeStruct((R, L), out_dtype),
        grid=grid,
        in_specs=[
            pl.BlockSpec((TB, 2), lambda i, j: (i, 0)),    # [scale, bias] per row
            pl.BlockSpec((TB, TL), lambda i, j: (i, j)),   # image planes
        ],
        out_specs=pl.BlockSpec((TB, TL), lambda i, j: (i, j)),
        compiler_params=pltpu.CompilerParams(
            dimension_semantics=("parallel", "parallel"),
            # Explicit budget: > v5e/v6e/v7x scoped defaults, < v7x's 64 MiB
            # physical VMEM per TC; fits the ~32 MiB double-buffered f32
            # working set of 256 x 8192 tiles with headroom.
            vmem_limit_bytes=48 << 20,
        ),
        cost_estimate=cost,
    )(sb, x2d)

    return out2d.reshape(B, C, H, W)


# TODO(synk): the only way past the HBM roofline here is fusing this
# normalization into an adjacent kernel (uint8 decode or the first conv /
# patch-embed); as a standalone op it necessarily reads + writes the batch once.


if __name__ == "__main__":
    key = jax.random.PRNGKey(0)

    # Small shapes consistent with the module: [batch, 3, H, W] images.
    B, C, H, W = 2, 3, 16, 16
    mean = (0.485, 0.456, 0.406)   # standard ImageNet normalization constants
    std = (0.229, 0.224, 0.225)

    x = jax.random.normal(key, (B, C, H, W), dtype=jnp.float32)

    out = image_normalize(x, mean, std)
    out = jax.block_until_ready(out)

    # Reference: (x - mean[1,3,1,1]) / std[1,3,1,1], same as the torch module.
    mean_b = jnp.asarray(mean, jnp.float32).reshape(1, C, 1, 1)
    std_b = jnp.asarray(std, jnp.float32).reshape(1, C, 1, 1)
    ref = (x - mean_b) / std_b

    assert out.shape == x.shape
    assert out.dtype == x.dtype
    assert bool(jnp.allclose(out, ref, rtol=1e-5, atol=1e-5)), "mismatch vs reference"

    print("KERNEL_OK")
</pallas_src>

<mosaic_0001>
module attributes {stable_mosaic.version = 11 : i64} {
  func.func @_normalize_kernel(%arg0: i32, %arg1: i32, %arg2: memref<6x2xf32, #tpu.memory_space<vmem>>, %arg3: memref<6x256xf32, #tpu.memory_space<vmem>>, %arg4: memref<6x256xf32, #tpu.memory_space<vmem>>) attributes {dimension_semantics = [#tpu.dimension_semantics<parallel>, #tpu.dimension_semantics<parallel>], iteration_bounds = array<i64: 1, 1>, scalar_prefetch = 0 : i64, scratch_operands = 0 : i64, tpu.core_type = #tpu.core_type<tc>, window_params = [{transform_indices = @transform_0, window_bounds = array<i64: 6, 2>}, {transform_indices = @transform_1, window_bounds = array<i64: 6, 256>}, {transform_indices = @transform_2, window_bounds = array<i64: 6, 256>}]} {
    %c0 = arith.constant 0 : index
    %c0_0 = arith.constant 0 : index
    %0 = vector.load %arg3[%c0, %c0_0] : memref<6x256xf32, #tpu.memory_space<vmem>>, vector<6x256xf32>
    %c0_1 = arith.constant 0 : index
    %c0_2 = arith.constant 0 : index
    %1 = vector.load %arg2[%c0_1, %c0_2] : memref<6x2xf32, #tpu.memory_space<vmem>>, vector<6x1xf32>
    %c0_3 = arith.constant 0 : index
    %c1 = arith.constant 1 : index
    %2 = vector.load %arg2[%c0_3, %c1] : memref<6x2xf32, #tpu.memory_space<vmem>>, vector<6x1xf32>
    %3 = vector.broadcast %1 : vector<6x1xf32> to vector<6x256xf32>
    %4 = arith.mulf %0, %3 : vector<6x256xf32>
    %5 = vector.broadcast %2 : vector<6x1xf32> to vector<6x256xf32>
    %6 = arith.addf %4, %5 : vector<6x256xf32>
    %c0_4 = arith.constant 0 : index
    %c0_5 = arith.constant 0 : index
    %7 = vector.load %arg4[%c0_4, %c0_5] : memref<6x256xf32, #tpu.memory_space<vmem>>, vector<6x256xf32>
    tpu.vector_store %arg4[%c0_4, %c0_5], %6 {strides = array<i32>} : memref<6x256xf32, #tpu.memory_space<vmem>>, vector<6x256xf32>,
    return
  }
  func.func @transform_0(%arg0: i32, %arg1: i32) -> (i32, i32) {
    %c0_i32 = arith.constant 0 : i32
    %c0_i32_0 = arith.constant 0 : i32
    return %arg0, %c0_i32 : i32, i32
  }
  func.func @transform_1(%arg0: i32, %arg1: i32) -> (i32, i32) {
    %c0_i32 = arith.constant 0 : i32
    return %arg0, %arg1 : i32, i32
  }
  func.func @transform_2(%arg0: i32, %arg1: i32) -> (i32, i32) {
    %c0_i32 = arith.constant 0 : i32
    return %arg0, %arg1 : i32, i32
  }
}

</mosaic_0001>

<bundles_post_ra>
// kernel: tpu_custom_call.1
= control target key start
LH: loop header
LB: loop body
LE: loop exit
PB: predicated region body
PF: predicated region fallthrough
CT: control target
= control target key end

     0   :  { %7 = vsyncpa [#allocation3], 0  ;;  %s157_s0 = inlined_call_operand.vmem [shape: f32[6,2], index: 0, kind: input, shape index: {}]   ;;  %s158_s1 = inlined_call_operand.hbm [shape: f32[6,256], index: 1, kind: input, shape index: {}]   ;;  %s159_s2 = inlined_call_operand.hbm [shape: f32[6,256], index: 2, kind: output, shape index: {}]  }
   0x1   :  { %8 = vsyncpa [#allocation4], 0  ;;  %s111_s9 = smov [#allocation2]   ;;  %s63_s13 = scalar_lea.hbm %s158_s1, 256 }
   0x2   :  { %s17_s10 = sshll.u32 %s111_s9, 4  ;;  %p64_p0 = scmp.ne.s32.totalorder %s158_s1, %s63_s13  ;;  %s18_s10 = int_to_ptr.vmem [resolvable:$true] %s17_s10 }
   0x3   :  { %p67_p1 = scmp.lt.u32.totalorder %s63_s13, %s158_s1 }
   0x5   :  { %p69_p2 = pnand %p67_p1, %p64_p0 }
   0x7   :  { %72 = shalt.err (!%p69_p2)
}
   0x8   :  { %s73_s18 = scalar_lea.vmem %s18_s10, 256  ;;  %p78_p4 = scmp.lt.s32.totalorder %s18_s10, %s18_s10 }
   0x9   :  { %p74_p3 = scmp.ne.s32.totalorder %s18_s10, %s73_s18  ;;  %p79_p5 = scmp.lt.s32.totalorder %s73_s18, %s73_s18 }
   0xb   :  { %p80_p6 = por %p79_p5, %p78_p4 }
   0xd   :  { %p81_p7 = pnand %p80_p6, %p74_p3 }
   0xf   :  { %84 = shalt.err (!%p81_p7)
}
  0x10   :  { %20 = dma.hbm_to_vmem [thread:$0]  %s158_s1, 256, %s18_s10, [#allocation3]  }
  0x11   :  { %107 = dma.done.wait [#allocation3], 256  }
  0x12   :  { %108 = vsyncadd [#allocation3], 4294967040  ;;  %v112_v0 = vmov 0   ;;  %v26_v1 = vld [vmem:[%s157_s0] sm:$0x3f]  ;;  %v113_v2 = vmov 1  }
  0x13   :  { %61 = vset.pattern.permute.xlu0 %v112_v0  ;;  %v24_v4 = vld [vmem:[#allocation2] sm:$0x3f]  ;;  %v25_v5 = vld [vmem:[#allocation2 + $0x8] sm:$0x3f]  ;;  %s114_s23 = smov [#allocation5]  }
  0x14   :  { %29 = vperm.xlu0 %61, %v26_v1   ;;  %s48_s24 = sshll.u32 %s114_s23, 4  ;;  %s49_s24 = int_to_ptr.vmem [resolvable:$true] %s48_s24 }
  0x15   :  { %s85_s1 = scalar_lea.vmem %s49_s24, 256  ;;  %p90_p9 = scmp.lt.s32.totalorder %s49_s24, %s49_s24 }
  0x16   :  { %p86_p8 = scmp.ne.s32.totalorder %s49_s24, %s85_s1  ;;  %p91_p10 = scmp.lt.s32.totalorder %s85_s1, %s85_s1 }
  0x18   :  { %62 = vset.pattern.permute.xlu0 %v113_v2  ;;  %p92_p11 = por %p91_p10, %p90_p9 }
  0x19   :  { %35 = vperm.xlu0 %62, %v26_v1  }
  0x1a   :  { %p93_p12 = pnand %p92_p11, %p86_p8 }
  0x93   :  { %v30_v3 = vpop.permute.xlu0 %29 }
  0x94   :  { %v32_v6 = vmul.f32 %v30_v3, %v24_v4  ;;  %v33_v7 = vmul.f32 %v30_v3, %v25_v5 }
  0x98   :  { %v36_v8 = vpop.permute.xlu0 %35 }
  0x99   :  { %v38_v9 = vadd.f32 %v36_v8, %v32_v6  ;;  %v39_v10 = vadd.f32 %v36_v8, %v33_v7 }
  0x9b   :  { %40 = vst [vmem:[#allocation5] sm:$0x3f] %v38_v9  ;;  %41 = vst [vmem:[#allocation5 + $0x8] sm:$0x3f] %v39_v10 }
  0x9c   :  { %96 = shalt.err (!%p93_p12)
}
  0x9d   :  { %s97_s26 = scalar_lea.hbm %s159_s2, 256 }
  0x9e   :  { %p98_p13 = scmp.ne.s32.totalorder %s159_s2, %s97_s26  ;;  %p101_p0 = scmp.lt.u32.totalorder %s97_s26, %s159_s2 }
  0xa0   :  { %p103_p1 = pnand %p101_p0, %p98_p13 }
  0xa2   :  { %106 = shalt.err (!%p103_p1)
}
  0xa3   :  { %51 = dma.vmem_to_hbm [thread:$0]  %s49_s24, 256, %s159_s2, [#allocation4]  }
  0xa4   :  { %109 = dma.done.wait [#allocation4], 256  }
  0xa5   :  { %110 = vsyncadd [#allocation4], 4294967040 }
  0xa6   :  { %55 = vsyncpa [#allocation3], 1 }
  0xa7   :  { %56 = vsyncpa [#allocation4], 1 }

</bundles_post_ra>
